<compile_context>
chip_gen: v7x
topology: tpu7x:2x2x1
jax: 0.10.0
libtpu: 0.0.40
codegen_flags: <defaults>
</compile_context>

<pallas_src>
import functools
import math

import jax
import jax.numpy as jnp
from jax import lax
from jax.experimental import pallas as pl
from jax.experimental.pallas import tpu as pltpu


def _round_up(x, m):
    return ((x + m - 1) // m) * m


def _pick_chunk(h_pad, th):
    """Largest multiple of 128 that divides h_pad and is <= max(th, 128)."""
    th = max(128, (min(th, h_pad) // 128) * 128)
    while h_pad % th != 0:
        th -= 128
    return th


def _gelu(h, approximate):
    if approximate:
        # tanh approximation (transcendental goes to the EUP slot). NOT torch's
        # nn.GELU() default; opt-in only when exact-erf parity can be relaxed.
        c = math.sqrt(2.0 / math.pi)
        return 0.5 * h * (1.0 + jnp.tanh(c * (h + 0.044715 * (h * h * h))))
    # exact erf GELU (torch.nn.GELU(approximate='none')), computed in f32.
    # TODO(synk): on v6e/v7x the f32 erf polynomial is the binding VALU slot; a bf16
    # erf-GELU would halve it, but bf16-erf lowering support is chip/compiler dependent.
    return 0.5 * h * (1.0 + lax.erf(h * (1.0 / math.sqrt(2.0))))


# ------------- Path A: VMEM-resident weights, in-kernel loop over H chunks -------------

def _resident_kernel(x_ref, w1_ref, b1_ref, w2_ref, b2_ref, o_ref, acc_ref,
                     *, th, n_chunks, approximate):
    acc_ref[...] = jnp.zeros_like(acc_ref)

    def body(j, carry):
        j0 = pl.multiple_of(j * th, 128)
        # fc1 chunk: (tm, C_pad) @ (C_pad, th) -> f32
        h = jnp.dot(x_ref[...], w1_ref[:, pl.ds(j0, th)],
                    preferred_element_type=jnp.float32)
        h = _gelu(h + b1_ref[:, pl.ds(j0, th)], approximate)
        # dropout p=0.0 == identity
        # fc2 partial product: (tm, th) @ (th, O_pad), f32 accumulation
        acc_ref[...] += jnp.dot(h.astype(w2_ref.dtype),
                                w2_ref[pl.ds(j0, th), :],
                                preferred_element_type=jnp.float32)
        return carry

    lax.fori_loop(0, n_chunks, body, 0, unroll=n_chunks <= 8)
    o_ref[...] = (acc_ref[...] + b2_ref[...]).astype(o_ref.dtype)


# ------------- Path B (fallback): H tiled as an "arbitrary" grid axis ------------------

def _tiled_kernel(x_ref, w1_ref, b1_ref, w2_ref, b2_ref, o_ref, acc_ref, *, approximate):
    k = pl.program_id(1)

    @pl.when(k == 0)
    def _():
        acc_ref[...] = jnp.zeros_like(acc_ref)

    h = jnp.dot(x_ref[...], w1_ref[...], preferred_element_type=jnp.float32)
    h = _gelu(h + b1_ref[...], approximate)
    acc_ref[...] += jnp.dot(h.astype(w2_ref.dtype), w2_ref[...],
                            preferred_element_type=jnp.float32)

    @pl.when(k == pl.num_programs(1) - 1)
    def _():
        o_ref[...] = (acc_ref[...] + b2_ref[...]).astype(o_ref.dtype)


def _pad_cast(a, target_shape, dtype):
    pads = tuple((0, t - s) for s, t in zip(a.shape, target_shape))
    if any(p for _, p in pads):
        a = jnp.pad(a, pads)
    if a.dtype != dtype:
        a = a.astype(dtype)
    return a


def mlp_pallas(x, w1, b1, w2, b2, *, tm=None, th=512,
               compute_dtype=jnp.bfloat16, gelu_approximate=False,
               vmem_limit_bytes=56 * 1024 * 1024, force_tiled=False):
    """x: (B, N, C). w1: (C, H), b1: (H,), w2: (H, O), b2: (O,). Returns (B, N, O)."""
    B, N, C = x.shape
    H = w1.shape[1]
    O = w2.shape[1]
    M = B * N
    out_dtype = x.dtype
    cd_size = jnp.dtype(compute_dtype).itemsize
    od_size = jnp.dtype(out_dtype).itemsize

    # Lane-dense channel padding (multiples of 128 -> no masked partial stores).
    C_pad = _round_up(C, 128)
    H_pad = _round_up(H, 128)   # fixed: pad H to 128, not to th
    O_pad = _round_up(O, 128)
    th_eff = _pick_chunk(H_pad, th)
    n_chunks = H_pad // th_eff

    # Row-tile size: bigger tiles on small-C/O stages to amortize per-step overhead.
    if tm is None:
        tm = 1024 if (C_pad <= 256 and O_pad <= 256) else 512
    tm_eff = min(tm, _round_up(M, 128))
    # Keep >= 2 row tiles when possible so the "parallel" axis feeds both v7x TensorCores.
    if _round_up(M, 128) // tm_eff < 2 and tm_eff > 128:
        tm_eff = max(128, _round_up(_round_up(M, 128) // 2, 128))
    M_pad = _round_up(M, tm_eff)

    # No-pad fast path: pad / cast only the operands that actually need it.
    x2 = _pad_cast(x.reshape(M, C), (M_pad, C_pad), compute_dtype)
    w1p = _pad_cast(w1, (C_pad, H_pad), compute_dtype)
    w2p = _pad_cast(w2, (H_pad, O_pad), compute_dtype)
    b1p = _pad_cast(b1.reshape(1, H), (1, H_pad), jnp.float32)
    b2p = _pad_cast(b2.reshape(1, O), (1, O_pad), jnp.float32)

    # Residency fit check (weights/biases conservatively counted double-buffered).
    resident_bytes = (
        2 * (C_pad * H_pad + H_pad * O_pad) * cd_size      # w1, w2
        + 2 * (H_pad + O_pad) * 4                          # b1, b2 (f32)
        + 2 * tm_eff * C_pad * cd_size                     # x row tile (double-buffered)
        + 2 * tm_eff * O_pad * od_size                     # output tile (double-buffered)
        + tm_eff * O_pad * 4                               # f32 accumulator scratch
        + 2 * tm_eff * th_eff * 4                          # fc1/GELU chunk intermediates
    )
    use_resident = (not force_tiled) and resident_bytes <= int(0.9 * vmem_limit_bytes)

    if use_resident:
        kernel = functools.partial(_resident_kernel, th=th_eff, n_chunks=n_chunks,
                                   approximate=gelu_approximate)
        grid = (M_pad // tm_eff,)
        in_specs = [
            pl.BlockSpec((tm_eff, C_pad), lambda i: (i, 0)),   # x row tile
            # Constant block index -> DMA'd once, VMEM-resident across all row tiles.
            # TODO(synk): on v7x consider pipeline_mode=pl.Buffered(1) for these constant
            # blocks to drop their unused second buffer (64 MiB/TC VMEM budget).
            pl.BlockSpec((C_pad, H_pad), lambda i: (0, 0)),    # w1 (resident)
            pl.BlockSpec((1, H_pad), lambda i: (0, 0)),        # b1 (resident)
            pl.BlockSpec((H_pad, O_pad), lambda i: (0, 0)),    # w2 (resident)
            pl.BlockSpec((1, O_pad), lambda i: (0, 0)),        # b2 (resident)
        ]
        out_specs = pl.BlockSpec((tm_eff, O_pad), lambda i: (i, 0))
        dim_sem = ("parallel",)
    else:
        kernel = functools.partial(_tiled_kernel, approximate=gelu_approximate)
        grid = (M_pad // tm_eff, n_chunks)
        in_specs = [
            pl.BlockSpec((tm_eff, C_pad), lambda i, k: (i, 0)),  # x row tile (const over k)
            pl.BlockSpec((C_pad, th_eff), lambda i, k: (0, k)),  # w1 H-chunk (streamed)
            pl.BlockSpec((1, th_eff), lambda i, k: (0, k)),      # b1 H-chunk
            pl.BlockSpec((th_eff, O_pad), lambda i, k: (k, 0)),  # w2 H-chunk (streamed)
            pl.BlockSpec((1, O_pad), lambda i, k: (0, 0)),       # b2 (constant)
        ]
        out_specs = pl.BlockSpec((tm_eff, O_pad), lambda i, k: (i, 0))
        dim_sem = ("parallel", "arbitrary")

    out = pl.pallas_call(
        kernel,
        out_shape=jax.ShapeDtypeStruct((M_pad, O_pad), out_dtype),
        grid_spec=pltpu.PrefetchScalarGridSpec(
            num_scalar_prefetch=0,
            grid=grid,
            in_specs=in_specs,
            out_specs=out_specs,
            scratch_shapes=[pltpu.VMEM((tm_eff, O_pad), jnp.float32)],
        ),
        compiler_params=pltpu.CompilerParams(
            dimension_semantics=dim_sem,
            vmem_limit_bytes=vmem_limit_bytes,
        ),
    )(x2, w1p, b1p, w2p, b2p)

    if M_pad != M or O_pad != O:
        out = out[:M, :O]
    return out.reshape(B, N, O)


def _reference_mlp(x, w1, b1, w2, b2):
    h = jnp.einsum("bnc,ch->bnh", x, w1, precision=lax.Precision.HIGHEST) + b1
    h = 0.5 * h * (1.0 + lax.erf(h * (1.0 / math.sqrt(2.0))))
    return jnp.einsum("bnh,ho->bno", h, w2, precision=lax.Precision.HIGHEST) + b2


if __name__ == "__main__":
    # Mlp(in_features=32, hidden_features=64) -> out_features defaults to in_features
    B, N = 2, 8
    in_features, hidden_features = 32, 64
    out_features = in_features

    key = jax.random.PRNGKey(0)
    kx, k1, k2, k3, k4 = jax.random.split(key, 5)

    x = jax.random.normal(kx, (B, N, in_features), dtype=jnp.float32)
    bound1 = 1.0 / math.sqrt(in_features)
    bound2 = 1.0 / math.sqrt(hidden_features)
    w1 = jax.random.uniform(k1, (in_features, hidden_features), jnp.float32, -bound1, bound1)
    b1 = jax.random.uniform(k2, (hidden_features,), jnp.float32, -bound1, bound1)
    w2 = jax.random.uniform(k3, (hidden_features, out_features), jnp.float32, -bound2, bound2)
    b2 = jax.random.uniform(k4, (out_features,), jnp.float32, -bound2, bound2)

    y_ref = _reference_mlp(x, w1, b1, w2, b2)

    # 1) f32 compute path, resident-weight kernel — near-exact vs the f32 reference.
    y32 = jax.block_until_ready(mlp_pallas(x, w1, b1, w2, b2, compute_dtype=jnp.float32))
    assert y32.shape == (B, N, out_features)
    assert jnp.allclose(y32, y_ref, atol=1e-4, rtol=1e-4), "f32 resident path mismatch"

    # 2) bf16 fast path (default): bf16 MXU operands, f32 accumulation + f32 exact GELU.
    ybf = jax.block_until_ready(mlp_pallas(x, w1, b1, w2, b2))
    assert ybf.shape == (B, N, out_features)
    assert jnp.allclose(ybf, y_ref, atol=5e-2, rtol=5e-2), "bf16 resident path mismatch"

    # 3) streamed-weight fallback path (used automatically when weights don't fit VMEM).
    ytl = jax.block_until_ready(mlp_pallas(x, w1, b1, w2, b2, force_tiled=True))
    assert ytl.shape == (B, N, out_features)
    assert jnp.allclose(ytl, y_ref, atol=5e-2, rtol=5e-2), "bf16 tiled path mismatch"

    print("KERNEL_OK")
</pallas_src>

<mosaic_0001>
module attributes {stable_mosaic.version = 11 : i64} {
  func.func @_resident_kernel(%arg0: i32, %arg1: memref<128x128xf32, #tpu.memory_space<vmem>>, %arg2: memref<128x128xf32, #tpu.memory_space<vmem>>, %arg3: memref<1x128xf32, #tpu.memory_space<vmem>>, %arg4: memref<128x128xf32, #tpu.memory_space<vmem>>, %arg5: memref<1x128xf32, #tpu.memory_space<vmem>>, %arg6: memref<128x128xf32, #tpu.memory_space<vmem>>, %arg7: memref<128x128xf32, #tpu.memory_space<vmem>>) attributes {dimension_semantics = [#tpu.dimension_semantics<parallel>], iteration_bounds = array<i64: 1>, scalar_prefetch = 0 : i64, scratch_operands = 1 : i64, tpu.core_type = #tpu.core_type<tc>, window_params = [{transform_indices = @transform_0, window_bounds = array<i64: 128, 128>}, {pipeline_mode = #tpu.pipeline_mode<synchronous>, transform_indices = @transform_1, window_bounds = array<i64: 128, 128>}, {pipeline_mode = #tpu.pipeline_mode<synchronous>, transform_indices = @transform_2, window_bounds = array<i64: 1, 128>}, {pipeline_mode = #tpu.pipeline_mode<synchronous>, transform_indices = @transform_3, window_bounds = array<i64: 128, 128>}, {pipeline_mode = #tpu.pipeline_mode<synchronous>, transform_indices = @transform_4, window_bounds = array<i64: 1, 128>}, {transform_indices = @transform_5, window_bounds = array<i64: 128, 128>}]} {
    %cst = arith.constant 0.000000e+00 : f32
    %0 = vector.broadcast %cst : f32 to vector<128x128xf32>
    %c0 = arith.constant 0 : index
    %c0_0 = arith.constant 0 : index
    %1 = vector.load %arg7[%c0, %c0_0] : memref<128x128xf32, #tpu.memory_space<vmem>>, vector<128x128xf32>
    tpu.vector_store %arg7[%c0, %c0_0], %0 {strides = array<i32>} : memref<128x128xf32, #tpu.memory_space<vmem>>, vector<128x128xf32>,
    %c0_i32 = arith.constant 0 : i32
    %c128_i32 = arith.constant 128 : i32
    %2 = arith.muli %c0_i32, %c128_i32 : i32
    %3 = tpu.assume_multiple %2, 128 : i32
    %c0_1 = arith.constant 0 : index
    %c0_2 = arith.constant 0 : index
    %4 = vector.load %arg1[%c0_1, %c0_2] : memref<128x128xf32, #tpu.memory_space<vmem>>, vector<128x128xf32>
    %c0_3 = arith.constant 0 : index
    %5 = arith.index_cast %3 : i32 to index
    %6 = vector.load %arg2[%c0_3, %5] : memref<128x128xf32, #tpu.memory_space<vmem>>, vector<128x128xf32>
    %cst_4 = arith.constant dense<0.000000e+00> : vector<128x128xf32>
    %7 = tpu.matmul %4, %6, %cst_4 {dimension_numbers = #tpu.dot_dimension_numbers<[1], [0], [0], [1], [0, 0, 1, 1], [], []>} : vector<128x128xf32>, vector<128x128xf32>, vector<128x128xf32> -> vector<128x128xf32>
    %c0_5 = arith.constant 0 : index
    %8 = arith.index_cast %3 : i32 to index
    %9 = vector.load %arg3[%c0_5, %8] : memref<1x128xf32, #tpu.memory_space<vmem>>, vector<1x128xf32>
    %10 = vector.broadcast %9 : vector<1x128xf32> to vector<128x128xf32>
    %11 = arith.addf %7, %10 : vector<128x128xf32>
    %cst_6 = arith.constant 5.000000e-01 : f32
    %12 = vector.broadcast %cst_6 : f32 to vector<128x128xf32>
    %13 = arith.mulf %12, %11 : vector<128x128xf32>
    %cst_7 = arith.constant 0.707106769 : f32
    %14 = vector.broadcast %cst_7 : f32 to vector<128x128xf32>
    %15 = arith.mulf %11, %14 : vector<128x128xf32>
    %16 = math.erf %15 : vector<128x128xf32>
    %cst_8 = arith.constant 1.000000e+00 : f32
    %17 = vector.broadcast %cst_8 : f32 to vector<128x128xf32>
    %18 = arith.addf %17, %16 : vector<128x128xf32>
    %19 = arith.mulf %13, %18 : vector<128x128xf32>
    %c0_9 = arith.constant 0 : index
    %c0_10 = arith.constant 0 : index
    %20 = vector.load %arg7[%c0_9, %c0_10] : memref<128x128xf32, #tpu.memory_space<vmem>>, vector<128x128xf32>
    %21 = arith.index_cast %3 : i32 to index
    %c0_11 = arith.constant 0 : index
    %22 = vector.load %arg4[%21, %c0_11] : memref<128x128xf32, #tpu.memory_space<vmem>>, vector<128x128xf32>
    %cst_12 = arith.constant dense<0.000000e+00> : vector<128x128xf32>
    %23 = tpu.matmul %19, %22, %cst_12 {dimension_numbers = #tpu.dot_dimension_numbers<[1], [0], [0], [1], [0, 0, 1, 1], [], []>} : vector<128x128xf32>, vector<128x128xf32>, vector<128x128xf32> -> vector<128x128xf32>
    %24 = arith.addf %20, %23 : vector<128x128xf32>
    %c0_13 = arith.constant 0 : index
    %c0_14 = arith.constant 0 : index
    %25 = vector.load %arg7[%c0_13, %c0_14] : memref<128x128xf32, #tpu.memory_space<vmem>>, vector<128x128xf32>
    tpu.vector_store %arg7[%c0_13, %c0_14], %24 {strides = array<i32>} : memref<128x128xf32, #tpu.memory_space<vmem>>, vector<128x128xf32>,
    %c1_i32 = arith.constant 1 : i32
    %c0_15 = arith.constant 0 : index
    %c0_16 = arith.constant 0 : index
    %26 = vector.load %arg7[%c0_15, %c0_16] : memref<128x128xf32, #tpu.memory_space<vmem>>, vector<128x128xf32>
    %c0_17 = arith.constant 0 : index
    %c0_18 = arith.constant 0 : index
    %27 = vector.load %arg5[%c0_17, %c0_18] : memref<1x128xf32, #tpu.memory_space<vmem>>, vector<1x128xf32>
    %28 = vector.broadcast %27 : vector<1x128xf32> to vector<128x128xf32>
    %29 = arith.addf %26, %28 : vector<128x128xf32>
    %c0_19 = arith.constant 0 : index
    %c0_20 = arith.constant 0 : index
    %30 = vector.load %arg6[%c0_19, %c0_20] : memref<128x128xf32, #tpu.memory_space<vmem>>, vector<128x128xf32>
    tpu.vector_store %arg6[%c0_19, %c0_20], %29 {strides = array<i32>} : memref<128x128xf32, #tpu.memory_space<vmem>>, vector<128x128xf32>,
    return
  }
  func.func @transform_0(%arg0: i32) -> (i32, i32) {
    %c0_i32 = arith.constant 0 : i32
    %c0_i32_0 = arith.constant 0 : i32
    return %arg0, %c0_i32 : i32, i32
  }
  func.func @transform_1(%arg0: i32) -> (i32, i32) {
    %c0_i32 = arith.constant 0 : i32
    %c0_i32_0 = arith.constant 0 : i32
    %c0_i32_1 = arith.constant 0 : i32
    return %c0_i32, %c0_i32_0 : i32, i32
  }
  func.func @transform_2(%arg0: i32) -> (i32, i32) {
    %c0_i32 = arith.constant 0 : i32
    %c0_i32_0 = arith.constant 0 : i32
    %c0_i32_1 = arith.constant 0 : i32
    return %c0_i32, %c0_i32_0 : i32, i32
  }
  func.func @transform_3(%arg0: i32) -> (i32, i32) {
    %c0_i32 = arith.constant 0 : i32
    %c0_i32_0 = arith.constant 0 : i32
    %c0_i32_1 = arith.constant 0 : i32
    return %c0_i32, %c0_i32_0 : i32, i32
  }
  func.func @transform_4(%arg0: i32) -> (i32, i32) {
    %c0_i32 = arith.constant 0 : i32
    %c0_i32_0 = arith.constant 0 : i32
    %c0_i32_1 = arith.constant 0 : i32
    return %c0_i32, %c0_i32_0 : i32, i32
  }
  func.func @transform_5(%arg0: i32) -> (i32, i32) {
    %c0_i32 = arith.constant 0 : i32
    %c0_i32_0 = arith.constant 0 : i32
    return %arg0, %c0_i32 : i32, i32
  }
}

</mosaic_0001>

<bundles_post_ra>
// kernel: tpu_custom_call.1
= control target key start
LH: loop header
LB: loop body
LE: loop exit
PB: predicated region body
PF: predicated region fallthrough
CT: control target
= control target key end

     0   :  { %10 = vsyncpa [#allocation4], 0  ;;  %s1137_s0 = inlined_call_operand.hbm [shape: f32[128,128], index: 0, kind: input, shape index: {}]   ;;  %s1138_s1 = inlined_call_operand.hbm [shape: f32[128,128], index: 1, kind: input, shape index: {}]   ;;  %s1139_s2 = inlined_call_operand.vmem [shape: f32[1,128], index: 2, kind: input, shape index: {}]   ;;  %s1140_s3 = inlined_call_operand.hbm [shape: f32[128,128], index: 3, kind: input, shape index: {}]   ;;  %s1141_s4 = inlined_call_operand.vmem [shape: f32[1,128], index: 4, kind: input, shape index: {}]   ;;  %s1142_s5 = inlined_call_operand.hbm [shape: f32[128,128], index: 5, kind: output, shape index: {}]  }
   0x1   :  { %11 = vsyncpa [#allocation7], 0 }
   0x2   :  { %12 = vsyncpa [#allocation5], 0  ;;  %s998_s18 = smov [#allocation6]   ;;  %s999_s20 = smov [#allocation3]  }
   0x3   :  { %s30_s19 = sshll.u32 %s998_s18, 4  ;;  %s18_s21 = sshll.u32 %s999_s20, 4  ;;  %s31_s19 = int_to_ptr.vmem [resolvable:$true] %s30_s19  ;;  %s1034_s21 = int_to_ptr.vmem [resolvable:$true] %s18_s21 }
   0x4   :  { %s904_s24 = scalar_lea.hbm %s1138_s1, 2048 }
   0x5   :  { %p905_p0 = scmp.ne.s32.totalorder %s1138_s1, %s904_s24  ;;  %p908_p1 = scmp.lt.u32.totalorder %s904_s24, %s1138_s1 }
   0x7   :  { %p910_p2 = pnand %p908_p1, %p905_p0 }
   0x9   :  { %913 = shalt.err (!%p910_p2)
}
   0xa   :  { %s914_s29 = scalar_lea.vmem %s31_s19, 2048  ;;  %p919_p4 = scmp.lt.s32.totalorder %s31_s19, %s31_s19 }
   0xb   :  { %p915_p3 = scmp.ne.s32.totalorder %s31_s19, %s914_s29  ;;  %p920_p5 = scmp.lt.s32.totalorder %s914_s29, %s914_s29 }
   0xd   :  { %p921_p6 = por %p920_p5, %p919_p4 }
   0xf   :  { %p922_p7 = pnand %p921_p6, %p915_p3 }
  0x11   :  { %925 = shalt.err (!%p922_p7)
}
  0x12   :  { %s1000_s30 = smov 128   ;;  %s1001_s6 = smov 8  }
  0x13   :  { %36 = dma.hbm_to_vmem [thread:$0]  %s1138_s1, 2048, %s31_s19, [#allocation7], %s1000_s30, %s1000_s30, %s1001_s6  }
  0x14   :  { %s926_s11 = scalar_lea.hbm %s1137_s0, 2048 }
  0x15   :  { %p927_p8 = scmp.ne.s32.totalorder %s1137_s0, %s926_s11  ;;  %p930_p9 = scmp.lt.u32.totalorder %s926_s11, %s1137_s0 }
  0x17   :  { %p932_p10 = pnand %p930_p9, %p927_p8 }
  0x19   :  { %935 = shalt.err (!%p932_p10)
}
  0x1a   :  { %s936_s16 = scalar_lea.vmem %s1034_s21, 2048  ;;  %p941_p12 = scmp.lt.s32.totalorder %s1034_s21, %s1034_s21 }
  0x1b   :  { %p937_p11 = scmp.ne.s32.totalorder %s1034_s21, %s936_s16  ;;  %p942_p13 = scmp.lt.s32.totalorder %s936_s16, %s936_s16 }
  0x1d   :  { %p943_p0 = por %p942_p13, %p941_p12 }
  0x1f   :  { %p944_p1 = pnand %p943_p0, %p937_p11 }
  0x21   :  { %947 = shalt.err (!%p944_p1)
}
  0x22   :  { %24 = dma.hbm_to_vmem [thread:$0]  %s1137_s0, 2048, %s1034_s21, [#allocation4], %s1000_s30, %s1000_s30, %s1001_s6  }
  0x23   :  { %s1002_s18 = smov [#allocation8]   ;;  %s948_s23 = scalar_lea.hbm %s1140_s3, 2048 }
  0x24   :  { %s44_s19 = sshll.u32 %s1002_s18, 4  ;;  %p949_p2 = scmp.ne.s32.totalorder %s1140_s3, %s948_s23  ;;  %s45_s19 = int_to_ptr.vmem [resolvable:$true] %s44_s19 }
  0x25   :  { %p952_p3 = scmp.lt.u32.totalorder %s948_s23, %s1140_s3 }
  0x27   :  { %p954_p4 = pnand %p952_p3, %p949_p2 }
  0x29   :  { %957 = shalt.err (!%p954_p4)
}
  0x2a   :  { %s958_s28 = scalar_lea.vmem %s45_s19, 2048  ;;  %p963_p6 = scmp.lt.s32.totalorder %s45_s19, %s45_s19 }
  0x2b   :  { %p959_p5 = scmp.ne.s32.totalorder %s45_s19, %s958_s28  ;;  %p964_p7 = scmp.lt.s32.totalorder %s958_s28, %s958_s28 }
  0x2d   :  { %p965_p8 = por %p964_p7, %p963_p6 }
  0x2f   :  { %p966_p9 = pnand %p965_p8, %p959_p5 }
  0x31   :  { %969 = shalt.err (!%p966_p9)
}
  0x32   :  { %50 = dma.hbm_to_vmem [thread:$0]  %s1140_s3, 2048, %s45_s19, [#allocation7], %s1000_s30, %s1000_s30, %s1001_s6  }
  0x33   :  { %992 = dma.done.wait [#allocation4], 2048  }
  0x34   :  { %993 = vsyncadd [#allocation4], 4294965248 }
  0x35   :  { %994 = dma.done.wait [#allocation7], 4096  }
  0x36   :  { %995 = vsyncadd [#allocation7], 4294963200  ;;  %v94_v0 = vld [vmem:[#allocation6] sm:$0xff]  ;;  %v95_v1 = vld [vmem:[#allocation6 + $0x8] sm:$0xff] }
  0x37   :  { %v96_v2 = vld [vmem:[#allocation6 + $0x10] sm:$0xff]  ;;  %v802_v3 = vpack.c.bf16 %v95_v1, %v94_v0  ;;  %v97_v4 = vld [vmem:[#allocation6 + $0x18] sm:$0xff]  ;;  %v98_v6 = vld [vmem:[#allocation6 + $0x20] sm:$0xff] }
  0x38   :  { %v806_v5 = vpack.c.bf16 %v97_v4, %v96_v2  ;;  %v99_v7 = vld [vmem:[#allocation6 + $0x28] sm:$0xff]  ;;  %v78_v9 = vld [vmem:[#allocation3] sm:$0xff]  ;;  %v100_v10 = vld [vmem:[#allocation6 + $0x30] sm:$0xff] }
  0x39   :  { %803 = vmatprep.subr.bf16.mxu0 %v802_v3  ;;  %v810_v8 = vpack.c.bf16 %v99_v7, %v98_v6  ;;  %v101_v11 = vld [vmem:[#allocation6 + $0x38] sm:$0xff]  ;;  %722 = vmatprep.mubr.f32.mxu0 %v78_v9  ;;  %v102_v13 = vld [vmem:[#allocation6 + $0x40] sm:$0xff]  ;;  %v103_v14 = vld [vmem:[#allocation6 + $0x48] sm:$0xff] }
  0x3a   :  { %805 = vmatpush3.bf16.msra.mxu0 %v802_v3  ;;  %v814_v12 = vpack.c.bf16 %v101_v11, %v100_v10  ;;  %v358_v15 = vld [vmem:[#allocation8] sm:$0xff]  ;;  %v359_v16 = vld [vmem:[#allocation8 + $0x8] sm:$0xff]  ;;  %v360_v17 = vld [vmem:[#allocation8 + $0x10] sm:$0xff]  ;;  %v818_v21 = vpack.c.bf16 %v103_v14, %v102_v13 }
  0x3b   :  { %807 = vmatprep.subr.bf16.mxu0 %v806_v5  ;;  %v361_v18 = vld [vmem:[#allocation8 + $0x18] sm:$0xff]  ;;  %v834_v19 = vpack.c.bf16 %v359_v16, %v358_v15  ;;  %v362_v22 = vld [vmem:[#allocation8 + $0x20] sm:$0xff]  ;;  %v363_v23 = vld [vmem:[#allocation8 + $0x28] sm:$0xff] }
  0x3c   :  { %v838_v20 = vpack.c.bf16 %v361_v18, %v360_v17  ;;  %v104_v24 = vld [vmem:[#allocation6 + $0x50] sm:$0xff]  ;;  %v105_v25 = vld [vmem:[#allocation6 + $0x58] sm:$0xff]  ;;  %v842_v26 = vpack.c.bf16 %v363_v23, %v362_v22  ;;  %v106_v28 = vld [vmem:[#allocation6 + $0x60] sm:$0xff] }
  0x3d   :  { %835 = vmatprep.subr.bf16.mxu1 %v834_v19  ;;  %v822_v27 = vpack.c.bf16 %v105_v25, %v104_v24  ;;  %v107_v29 = vld [vmem:[#allocation6 + $0x68] sm:$0xff]  ;;  %v108_v31 = vld [vmem:[#allocation6 + $0x70] sm:$0xff]  ;;  %v109_v32 = vld [vmem:[#allocation6 + $0x78] sm:$0xff] }
  0x3e   :  { %809 = vmatpush3.bf16.msra.mxu0 %v806_v5  ;;  %837 = vmatpush3.bf16.msra.mxu1 %v834_v19  ;;  %v826_v30 = vpack.c.bf16 %v107_v29, %v106_v28  ;;  %v830_v33 = vpack.c.bf16 %v109_v32, %v108_v31  ;;  %v79_v34 = vld [vmem:[#allocation3 + $0x8] sm:$0xff]  ;;  %v80_v35 = vld [vmem:[#allocation3 + $0x10] sm:$0xff]  ;;  %v81_v36 = vld [vmem:[#allocation3 + $0x18] sm:$0xff] }
  0x3f   :  { %811 = vmatprep.subr.bf16.mxu0 %v810_v8  ;;  %839 = vmatprep.subr.bf16.mxu1 %v838_v20  ;;  %v82_v37 = vld [vmem:[#allocation3 + $0x20] sm:$0xff]  ;;  %v83_v38 = vld [vmem:[#allocation3 + $0x28] sm:$0xff]  ;;  %v84_v39 = vld [vmem:[#allocation3 + $0x30] sm:$0xff] }
  0x40   :  { %v85_v40 = vld [vmem:[#allocation3 + $0x38] sm:$0xff]  ;;  %v86_v41 = vld [vmem:[#allocation3 + $0x40] sm:$0xff]  ;;  %v87_v42 = vld [vmem:[#allocation3 + $0x48] sm:$0xff] }
  0x41   :  { %v88_v43 = vld [vmem:[#allocation3 + $0x50] sm:$0xff]  ;;  %v89_v44 = vld [vmem:[#allocation3 + $0x58] sm:$0xff]  ;;  %v90_v45 = vld [vmem:[#allocation3 + $0x60] sm:$0xff] }
  0x42   :  { %813 = vmatpush3.bf16.msra.mxu0 %v810_v8  ;;  %841 = vmatpush3.bf16.msra.mxu1 %v838_v20  ;;  %v91_v46 = vld [vmem:[#allocation3 + $0x68] sm:$0xff]  ;;  %v92_v47 = vld [vmem:[#allocation3 + $0x70] sm:$0xff]  ;;  %v93_v48 = vld [vmem:[#allocation3 + $0x78] sm:$0xff] }
  0x43   :  { %815 = vmatprep.subr.bf16.mxu0 %v814_v12  ;;  %843 = vmatprep.subr.bf16.mxu1 %v842_v26  ;;  %v364_v49 = vld [vmem:[#allocation8 + $0x30] sm:$0xff]  ;;  %v365_v50 = vld [vmem:[#allocation8 + $0x38] sm:$0xff]  ;;  %v366_v52 = vld [vmem:[#allocation8 + $0x40] sm:$0xff] }
  0x44   :  { %v846_v51 = vpack.c.bf16 %v365_v50, %v364_v49  ;;  %v367_v53 = vld [vmem:[#allocation8 + $0x48] sm:$0xff]  ;;  %v368_v55 = vld [vmem:[#allocation8 + $0x50] sm:$0xff]  ;;  %v369_v56 = vld [vmem:[#allocation8 + $0x58] sm:$0xff] }
  0x45   :  { %v850_v54 = vpack.c.bf16 %v367_v53, %v366_v52  ;;  %v854_v57 = vpack.c.bf16 %v369_v56, %v368_v55  ;;  %v370_v58 = vld [vmem:[#allocation8 + $0x60] sm:$0xff]  ;;  %v371_v59 = vld [vmem:[#allocation8 + $0x68] sm:$0xff]  ;;  %v372_v61 = vld [vmem:[#allocation8 + $0x70] sm:$0xff] }
  0x46   :  { %817 = vmatpush3.bf16.msra.mxu0 %v814_v12  ;;  %845 = vmatpush3.bf16.msra.mxu1 %v842_v26  ;;  %v858_v60 = vpack.c.bf16 %v371_v59, %v370_v58  ;;  %v373_v62 = vld [vmem:[#allocation8 + $0x78] sm:$0xff]  ;;  %v1089_v0 = vld [vmem:[%s1139_s2] ss:$0 sm:$0xff] }
  0x47   :  { %819 = vmatprep.subr.bf16.mxu0 %v818_v21  ;;  %847 = vmatprep.subr.bf16.mxu1 %v846_v51  ;;  %v862_v63 = vpack.c.bf16 %v373_v62, %v372_v61 }
  0x4a   :  { %821 = vmatpush3.bf16.msra.mxu0 %v818_v21  ;;  %849 = vmatpush3.bf16.msra.mxu1 %v846_v51 }
  0x4b   :  { %823 = vmatprep.subr.bf16.mxu0 %v822_v27  ;;  %851 = vmatprep.subr.bf16.mxu1 %v850_v54 }
  0x4e   :  { %825 = vmatpush3.bf16.msra.mxu0 %v822_v27  ;;  %853 = vmatpush3.bf16.msra.mxu1 %v850_v54 }
  0x4f   :  { %827 = vmatprep.subr.bf16.mxu0 %v826_v30  ;;  %855 = vmatprep.subr.bf16.mxu1 %v854_v57 }
  0x52   :  { %829 = vmatpush3.bf16.msra.mxu0 %v826_v30  ;;  %857 = vmatpush3.bf16.msra.mxu1 %v854_v57 }
  0x53   :  { %831 = vmatprep.subr.bf16.mxu0 %v830_v33  ;;  %859 = vmatprep.subr.bf16.mxu1 %v858_v60 }
  0x56   :  { %833 = vmatpush3.bf16.msra.mxu0 %v830_v33  ;;  %861 = vmatpush3.bf16.msra.mxu1 %v858_v60 }
  0x57   :  { %863 = vmatprep.subr.bf16.mxu1 %v862_v63 }
  0x59   :  { %723 = vmatmul.mubr.f32.vlgmr.msra.gmra.mrb[0].mxu0 %v79_v34 }
  0x5a   :  { %725 = vmatprep.mubr.f32.mxu0 %v80_v35  ;;  %865 = vmatpush3.bf16.msra.mxu1 %v862_v63 }
  0x5d   :  { %726 = vmatmul.mubr.f32.gmra.mrb[2].mxu0 %v81_v36 }
  0x5e   :  { %728 = vmatprep.mubr.f32.mxu0 %v82_v37 }
  0x61   :  { %729 = vmatmul.mubr.f32.gmra.mrb[4].mxu0 %v83_v38 }
  0x62   :  { %731 = vmatprep.mubr.f32.mxu0 %v84_v39 }
  0x65   :  { %732 = vmatmul.mubr.f32.gmra.mrb[6].mxu0 %v85_v40 }
  0x66   :  { %734 = vmatprep.mubr.f32.mxu0 %v86_v41 }
  0x69   :  { %735 = vmatmul.mubr.f32.gmra.mrb[8].mxu0 %v87_v42 }
  0x6a   :  { %737 = vmatprep.mubr.f32.mxu0 %v88_v43 }
  0x6d   :  { %738 = vmatmul.mubr.f32.gmra.mrb[10].mxu0 %v89_v44 }
  0x6e   :  { %740 = vmatprep.mubr.f32.mxu0 %v90_v45 }
  0x71   :  { %741 = vmatmul.mubr.f32.gmra.mrb[12].mxu0 %v91_v46 }
  0x72   :  { %743 = vmatprep.mubr.f32.mxu0 %v92_v47 }
  0x75   :  { %744 = vmatmul.mubr.f32.gmra.mrb[14].mxu0 %v93_v48 }
 0x12c   :  { %v724_v1 = vpop.f32.mrb[0].mxu0 }
 0x12d   :  { %v189_v2 = vadd.f32 %v724_v1, %v1089_v0  ;;  %v183_v3 = vpop.f32.mrb[1].mxu0 }
 0x12e   :  { %v184_v4 = vadd.f32 %v1089_v0, %v183_v3 }
 0x12f   :  { %v279_v5 = vmul.f32 0.70710677, %v189_v2  ;;  %v263_v33 = vmul.f32 0.5, %v189_v2 }
 0x130   :  { %v278_v6 = vmul.f32 0.70710677, %v184_v4  ;;  %v727_v7 = vpop.f32.mrb[2].mxu0  ;;  %v262_v31 = vmul.f32 0.5, %v184_v4 }
 0x131   :  { %872 = verf.f32 %v279_v5  ;;  %v199_v8 = vadd.f32 %v727_v7, %v1089_v0  ;;  %v193_v9 = vpop.f32.mrb[3].mxu0 }
 0x132   :  { %874 = verf.f32 %v278_v6  ;;  %v194_v10 = vadd.f32 %v1089_v0, %v193_v9 }
 0x133   :  { %v281_v11 = vmul.f32 0.70710677, %v199_v8  ;;  %v265_v47 = vmul.f32 0.5, %v199_v8 }
 0x134   :  { %v280_v12 = vmul.f32 0.70710677, %v194_v10  ;;  %v730_v13 = vpop.f32.mrb[4].mxu0  ;;  %v264_v43 = vmul.f32 0.5, %v194_v10 }
 0x135   :  { %876 = verf.f32 %v281_v11  ;;  %v209_v14 = vadd.f32 %v730_v13, %v1089_v0  ;;  %v203_v15 = vpop.f32.mrb[5].mxu0 }
 0x136   :  { %878 = verf.f32 %v280_v12  ;;  %v204_v16 = vadd.f32 %v1089_v0, %v203_v15 }
 0x137   :  { %v283_v17 = vmul.f32 0.70710677, %v209_v14  ;;  %v267_v61 = vmul.f32 0.5, %v209_v14 }
 0x138   :  { %v282_v18 = vmul.f32 0.70710677, %v204_v16  ;;  %v733_v19 = vpop.f32.mrb[6].mxu0  ;;  %v266_v57 = vmul.f32 0.5, %v204_v16 }
 0x139   :  { %880 = verf.f32 %v283_v17  ;;  %v1098_v20 = vadd.f32 %v733_v19, %v1089_v0  ;;  %v213_v21 = vpop.f32.mrb[7].mxu0 }
 0x13a   :  { %882 = verf.f32 %v282_v18  ;;  %v214_v22 = vadd.f32 %v1089_v0, %v213_v21 }
 0x13b   :  { %v873_v23 = vpop.eup %872  ;;  %v285_v24 = vmul.f32 0.70710677, %v1098_v20  ;;  %v269_v12 = vmul.f32 0.5, %v1098_v20 }
 0x13c   :  { %v875_v25 = vpop.eup %874  ;;  %v311_v26 = vadd.f32 1.0, %v873_v23  ;;  %v284_v27 = vmul.f32 0.70710677, %v214_v22  ;;  %v736_v28 = vpop.f32.mrb[8].mxu0  ;;  %v268_v8 = vmul.f32 0.5, %v214_v22 }
 0x13d   :  { %884 = verf.f32 %v285_v24  ;;  %v1103_v29 = vadd.f32 %v736_v28, %v1089_v0  ;;  %v223_v30 = vpop.f32.mrb[9].mxu0  ;;  %v310_v32 = vadd.f32 1.0, %v875_v25 }
 0x13e   :  { %886 = verf.f32 %v284_v27  ;;  %v224_v34 = vadd.f32 %v1089_v0, %v223_v30  ;;  %v327_v42 = vmul.f32 %v311_v26, %v263_v33 }
 0x13f   :  { %v877_v35 = vpop.eup %876  ;;  %v287_v36 = vmul.f32 0.70710677, %v1103_v29  ;;  %v326_v37 = vmul.f32 %v310_v32, %v262_v31  ;;  %v271_v24 = vmul.f32 0.5, %v1103_v29 }
 0x140   :  { %v879_v38 = vpop.eup %878  ;;  %v313_v39 = vadd.f32 1.0, %v877_v35  ;;  %v286_v40 = vmul.f32 0.70710677, %v224_v34  ;;  %v739_v41 = vpop.f32.mrb[10].mxu0  ;;  %v270_v22 = vmul.f32 0.5, %v224_v34 }
 0x141   :  { %v312_v44 = vadd.f32 1.0, %v879_v38  ;;  %888 = verf.f32 %v287_v36  ;;  %v1108_v45 = vadd.f32 %v739_v41, %v1089_v0  ;;  %v233_v46 = vpop.f32.mrb[11].mxu0  ;;  %778 = vmatprep.mubr.f32.mxu1 %v326_v37 }
 0x142   :  { %890 = verf.f32 %v286_v40  ;;  %v234_v48 = vadd.f32 %v1089_v0, %v233_v46  ;;  %779 = vmatmul.mubr.f32.vlgmr.msra.gmra.mrb[0].mxu1 %v327_v42  ;;  %v329_v56 = vmul.f32 %v313_v39, %v265_v47 }
 0x143   :  { %v881_v49 = vpop.eup %880  ;;  %v289_v50 = vmul.f32 0.70710677, %v1108_v45  ;;  %v328_v51 = vmul.f32 %v312_v44, %v264_v43  ;;  %v273_v31 = vmul.f32 0.5, %v1108_v45 }
 0x144   :  { %v883_v52 = vpop.eup %882  ;;  %v315_v53 = vadd.f32 1.0, %v881_v49  ;;  %v288_v54 = vmul.f32 0.70710677, %v234_v48  ;;  %v742_v55 = vpop.f32.mrb[12].mxu0  ;;  %v272_v28 = vmul.f32 0.5, %v234_v48 }
 0x145   :  { %v314_v58 = vadd.f32 1.0, %v883_v52  ;;  %892 = verf.f32 %v289_v50  ;;  %v249_v59 = vadd.f32 %v742_v55, %v1089_v0  ;;  %v243_v60 = vpop.f32.mrb[13].mxu0  ;;  %781 = vmatprep.mubr.f32.mxu1 %v328_v51  ;;  %v625_v49 = vld [vmem:[%s1141_s4] ss:$0 sm:$0xff]  ;;  %s1003_s4 = smov [#allocation9]  }
 0x146   :  { %894 = verf.f32 %v288_v54  ;;  %v244_v62 = vadd.f32 %v1089_v0, %v243_v60  ;;  %782 = vmatmul.mubr.f32.gmra.mrb[2].mxu1 %v329_v56  ;;  %v331_v7 = vmul.f32 %v315_v53, %v267_v61  ;;  %s611_s8 = sshll.u32 %s1003_s4, 4  ;;  %s612_s8 = int_to_ptr.vmem [resolvable:$true] %s611_s8 }
 0x147   :  { %v885_v63 = vpop.eup %884  ;;  %v291_v1 = vmul.f32 0.70710677, %v249_v59  ;;  %v330_v2 = vmul.f32 %v314_v58, %v266_v57  ;;  %v275_v38 = vmul.f32 0.5, %v249_v59  ;;  %s970_s9 = scalar_lea.vmem %s612_s8, 2048  ;;  %p975_p11 = scmp.lt.s32.totalorder %s612_s8, %s612_s8 }
 0x148   :  { %v887_v3 = vpop.eup %886  ;;  %v317_v4 = vadd.f32 1.0, %v885_v63  ;;  %v290_v5 = vmul.f32 0.70710677, %v244_v62  ;;  %v745_v6 = vpop.f32.mrb[14].mxu0  ;;  %v274_v37 = vmul.f32 0.5, %v244_v62  ;;  %p971_p10 = scmp.ne.s32.totalorder %s612_s8, %s970_s9  ;;  %p976_p12 = scmp.lt.s32.totalorder %s970_s9, %s970_s9 }
 0x149   :  { %v316_v9 = vadd.f32 1.0, %v887_v3  ;;  %896 = verf.f32 %v291_v1  ;;  %v259_v10 = vadd.f32 %v745_v6, %v1089_v0  ;;  %v253_v11 = vpop.f32.mrb[15].mxu0  ;;  %784 = vmatprep.mubr.f32.mxu1 %v330_v2 }
 0x14a   :  { %898 = verf.f32 %v290_v5  ;;  %v254_v13 = vadd.f32 %v1089_v0, %v253_v11  ;;  %785 = vmatmul.mubr.f32.gmra.mrb[4].mxu1 %v331_v7  ;;  %v333_v21 = vmul.f32 %v317_v4, %v269_v12  ;;  %p977_p13 = por %p976_p12, %p975_p11 }
 0x14b   :  { %v889_v14 = vpop.eup %888  ;;  %v293_v15 = vmul.f32 0.70710677, %v259_v10  ;;  %v332_v16 = vmul.f32 %v316_v9, %v268_v8  ;;  %v277_v45 = vmul.f32 0.5, %v259_v10 }
 0x14c   :  { %v891_v17 = vpop.eup %890  ;;  %v319_v18 = vadd.f32 1.0, %v889_v14  ;;  %v292_v19 = vmul.f32 0.70710677, %v254_v13  ;;  %v276_v44 = vmul.f32 0.5, %v254_v13  ;;  %p978_p0 = pnand %p977_p13, %p971_p10 }
 0x14d   :  { %v318_v23 = vadd.f32 1.0, %v891_v17  ;;  %900 = verf.f32 %v293_v15  ;;  %787 = vmatprep.mubr.f32.mxu1 %v332_v16 }
 0x14e   :  { %902 = verf.f32 %v292_v19  ;;  %788 = vmatmul.mubr.f32.gmra.mrb[6].mxu1 %v333_v21  ;;  %v335_v27 = vmul.f32 %v319_v18, %v271_v24 }
 0x14f   :  { %v893_v20 = vpop.eup %892  ;;  %v334_v25 = vmul.f32 %v318_v23, %v270_v22 }
 0x150   :  { %v895_v26 = vpop.eup %894  ;;  %v321_v0 = vadd.f32 1.0, %v893_v20 }
 0x151   :  { %v320_v30 = vadd.f32 1.0, %v895_v26  ;;  %790 = vmatprep.mubr.f32.mxu1 %v334_v25 }
 0x152   :  { %791 = vmatmul.mubr.f32.gmra.mrb[8].mxu1 %v335_v27  ;;  %v337_v36 = vmul.f32 %v321_v0, %v273_v31 }
 0x153   :  { %v897_v32 = vpop.eup %896  ;;  %v336_v33 = vmul.f32 %v320_v30, %v272_v28 }
 0x154   :  { %v899_v34 = vpop.eup %898  ;;  %v323_v35 = vadd.f32 1.0, %v897_v32 }
 0x155   :  { %v322_v29 = vadd.f32 1.0, %v899_v34  ;;  %793 = vmatprep.mubr.f32.mxu1 %v336_v33 }
 0x156   :  { %794 = vmatmul.mubr.f32.gmra.mrb[10].mxu1 %v337_v36  ;;  %v339_v43 = vmul.f32 %v323_v35, %v275_v38 }
 0x157   :  { %v901_v39 = vpop.eup %900  ;;  %v338_v40 = vmul.f32 %v322_v29, %v274_v37 }
 0x158   :  { %v903_v41 = vpop.eup %902  ;;  %v325_v42 = vadd.f32 1.0, %v901_v39 }
 0x159   :  { %v324_v46 = vadd.f32 1.0, %v903_v41  ;;  %796 = vmatprep.mubr.f32.mxu1 %v338_v40 }
 0x15a   :  { %797 = vmatmul.mubr.f32.gmra.mrb[12].mxu1 %v339_v43  ;;  %v341_v48 = vmul.f32 %v325_v42, %v277_v45 }
 0x15b   :  { %v340_v47 = vmul.f32 %v324_v46, %v276_v44 }
 0x15d   :  { %799 = vmatprep.mubr.f32.mxu1 %v340_v47 }
 0x15e   :  { %800 = vmatmul.mubr.f32.gmra.mrb[14].mxu1 %v341_v48 }
 0x215   :  { %v780_v50 = vpop.f32.mrb[0].mxu1 }
 0x216   :  { %v575_v51 = vadd.f32 %v780_v50, %v625_v49  ;;  %v440_v52 = vpop.f32.mrb[1].mxu1 }
 0x217   :  { %v574_v53 = vadd.f32 %v625_v49, %v440_v52 }
 0x218   :  { %591 = vst [vmem:[#allocation9 + $0x8] sm:$0xff] %v575_v51 }
 0x219   :  { %590 = vst [vmem:[#allocation9] sm:$0xff] %v574_v53  ;;  %v783_v54 = vpop.f32.mrb[2].mxu1 }
 0x21a   :  { %v577_v55 = vadd.f32 %v783_v54, %v625_v49  ;;  %v450_v56 = vpop.f32.mrb[3].mxu1 }
 0x21b   :  { %v576_v57 = vadd.f32 %v625_v49, %v450_v56 }
 0x21c   :  { %593 = vst [vmem:[#allocation9 + $0x18] sm:$0xff] %v577_v55 }
 0x21d   :  { %592 = vst [vmem:[#allocation9 + $0x10] sm:$0xff] %v576_v57  ;;  %v786_v58 = vpop.f32.mrb[4].mxu1 }
 0x21e   :  { %v579_v59 = vadd.f32 %v786_v58, %v625_v49  ;;  %v460_v60 = vpop.f32.mrb[5].mxu1 }
 0x21f   :  { %v578_v61 = vadd.f32 %v625_v49, %v460_v60 }
 0x220   :  { %595 = vst [vmem:[#allocation9 + $0x28] sm:$0xff] %v579_v59 }
 0x221   :  { %594 = vst [vmem:[#allocation9 + $0x20] sm:$0xff] %v578_v61  ;;  %v789_v62 = vpop.f32.mrb[6].mxu1 }
 0x222   :  { %v581_v63 = vadd.f32 %v789_v62, %v625_v49  ;;  %v470_v1 = vpop.f32.mrb[7].mxu1 }
 0x223   :  { %v580_v2 = vadd.f32 %v625_v49, %v470_v1 }
 0x224   :  { %597 = vst [vmem:[#allocation9 + $0x38] sm:$0xff] %v581_v63 }
 0x225   :  { %596 = vst [vmem:[#allocation9 + $0x30] sm:$0xff] %v580_v2  ;;  %v792_v3 = vpop.f32.mrb[8].mxu1 }
 0x226   :  { %v583_v4 = vadd.f32 %v792_v3, %v625_v49  ;;  %v480_v5 = vpop.f32.mrb[9].mxu1 }
 0x227   :  { %v582_v6 = vadd.f32 %v625_v49, %v480_v5 }
 0x228   :  { %599 = vst [vmem:[#allocation9 + $0x48] sm:$0xff] %v583_v4 }
 0x229   :  { %598 = vst [vmem:[#allocation9 + $0x40] sm:$0xff] %v582_v6  ;;  %v795_v7 = vpop.f32.mrb[10].mxu1 }
 0x22a   :  { %v585_v8 = vadd.f32 %v795_v7, %v625_v49  ;;  %v490_v9 = vpop.f32.mrb[11].mxu1 }
 0x22b   :  { %v584_v10 = vadd.f32 %v625_v49, %v490_v9 }
 0x22c   :  { %601 = vst [vmem:[#allocation9 + $0x58] sm:$0xff] %v585_v8 }
 0x22d   :  { %600 = vst [vmem:[#allocation9 + $0x50] sm:$0xff] %v584_v10  ;;  %v798_v11 = vpop.f32.mrb[12].mxu1 }
 0x22e   :  { %v587_v12 = vadd.f32 %v798_v11, %v625_v49  ;;  %v500_v13 = vpop.f32.mrb[13].mxu1 }
 0x22f   :  { %v586_v14 = vadd.f32 %v625_v49, %v500_v13 }
 0x230   :  { %603 = vst [vmem:[#allocation9 + $0x68] sm:$0xff] %v587_v12 }
 0x231   :  { %602 = vst [vmem:[#allocation9 + $0x60] sm:$0xff] %v586_v14  ;;  %v801_v15 = vpop.f32.mrb[14].mxu1 }
 0x232   :  { %v589_v16 = vadd.f32 %v801_v15, %v625_v49  ;;  %v510_v17 = vpop.f32.mrb[15].mxu1 }
 0x233   :  { %v588_v18 = vadd.f32 %v625_v49, %v510_v17 }
 0x234   :  { %605 = vst [vmem:[#allocation9 + $0x78] sm:$0xff] %v589_v16 }
 0x235   :  { %604 = vst [vmem:[#allocation9 + $0x70] sm:$0xff] %v588_v18 }
 0x236   :  { %981 = shalt.err (!%p978_p0)
}
 0x237   :  { %s982_s12 = scalar_lea.hbm %s1142_s5, 2048 }
 0x238   :  { %p983_p1 = scmp.ne.s32.totalorder %s1142_s5, %s982_s12  ;;  %p986_p2 = scmp.lt.u32.totalorder %s982_s12, %s1142_s5 }
 0x23a   :  { %p988_p3 = pnand %p986_p2, %p983_p1 }
 0x23c   :  { %991 = shalt.err (!%p988_p3)
}
 0x23d   :  { %617 = dma.vmem_to_hbm [thread:$0]  %s612_s8, 2048, %s1142_s5, [#allocation5], %s1000_s30, %s1000_s30, %s1001_s6  }
 0x23e   :  { %996 = dma.done.wait [#allocation5], 2048  }
 0x23f   :  { %997 = vsyncadd [#allocation5], 4294965248 }
 0x240   :  { %621 = vsyncpa [#allocation4], 1 }
 0x241   :  { %622 = vsyncpa [#allocation7], 1 }
 0x242   :  { %623 = vsyncpa [#allocation5], 1 }

</bundles_post_ra>
